<compile_context>
chip_gen: v7x
topology: tpu7x:2x2x1
jax: 0.10.0
libtpu: 0.0.40
codegen_flags: <defaults>
</compile_context>

<pallas_src>
import functools
import math

import jax
import jax.numpy as jnp
from jax.experimental import pallas as pl
from jax.experimental.pallas import tpu as pltpu


def _round_up(v, m):
    return -(-v // m) * m


def _pack_params(params):
    """Pack all weights/biases into a single (rows, hidden) f32 buffer.

    Row layout (each segment starts at an 8-aligned row offset):
      [o1, o1+ni)   : W1  (ni, H)
      [o2, o2+H)    : W2  (H, H)
      [o3, o3+H)    : W3  (H, H)
      ob+0..ob+2    : b1, b2, b3          (one row each)
      ob+3          : W4^T                (row of length H)
      ob+4          : b4 replicated across the row
    """
    ni, hidden = params["w1"].shape
    o1 = 0
    o2 = o1 + _round_up(ni, 8)
    o3 = o2 + _round_up(hidden, 8)
    ob = o3 + _round_up(hidden, 8)
    rows = ob + 8
    f32 = jnp.float32

    packed = jnp.zeros((rows, hidden), f32)
    packed = packed.at[o1:o1 + ni, :].set(params["w1"].astype(f32))
    packed = packed.at[o2:o2 + hidden, :].set(params["w2"].astype(f32))
    packed = packed.at[o3:o3 + hidden, :].set(params["w3"].astype(f32))
    packed = packed.at[ob + 0, :].set(params["b1"].astype(f32).reshape(hidden))
    packed = packed.at[ob + 1, :].set(params["b2"].astype(f32).reshape(hidden))
    packed = packed.at[ob + 2, :].set(params["b3"].astype(f32).reshape(hidden))
    packed = packed.at[ob + 3, :].set(params["w4"].astype(f32).reshape(hidden))
    packed = packed.at[ob + 4, :].set(
        jnp.broadcast_to(params["b4"].astype(f32).reshape(-1)[:1], (hidden,)))
    return packed, (o1, o2, o3, ob)


def _value_mlp_kernel(x_ref, p_ref, o_ref, *, ni, hidden, o1, o2, o3, ob):
    """Fused 4-layer MLP forward for one batch tile (everything in VMEM)."""
    # x arrives in its native dtype (e.g. bf16) -> cast once to f32 for compute.
    x = x_ref[...].astype(jnp.float32)

    # Static slices of the packed parameter buffer are zero-cost ref views.
    w1 = p_ref[o1:o1 + ni, :]
    w2 = p_ref[o2:o2 + hidden, :]
    w3 = p_ref[o3:o3 + hidden, :]
    b1 = p_ref[ob + 0:ob + 1, :]
    b2 = p_ref[ob + 1:ob + 2, :]
    b3 = p_ref[ob + 2:ob + 3, :]
    w4 = p_ref[ob + 3:ob + 4, :]          # (1, H) == W4^T
    b4 = p_ref[ob + 4:ob + 5, 0:1]        # (1, 1)

    h = jnp.tanh(jnp.dot(x, w1, preferred_element_type=jnp.float32) + b1)
    h = jnp.tanh(jnp.dot(h, w2, preferred_element_type=jnp.float32) + b2)
    h = jnp.tanh(jnp.dot(h, w3, preferred_element_type=jnp.float32) + b3)

    # Final (H -> 1) layer as VPU multiply + cross-lane reduce instead of an
    # N=1 MXU matmul (keeps the MXU out of a 1-column push/pop).
    o_ref[...] = jnp.sum(h * w4, axis=-1, keepdims=True) + b4


def _default_batch_tile(n):
    # Small batches: a single full-array block (exempt from (8,128) tiling).
    if n <= 256:
        return n
    # Otherwise: at least 2 grid steps (so the "parallel" axis can shard across
    # the two v7x TensorCores and double-buffering can hide the x DMA), capped
    # at 2048 rows per step, rounded to a multiple of 128.
    return max(128, min(2048, _round_up(_round_up(n, 2) // 2, 128)))


def value_forward(x, params, *, batch_tile=None):
    """Fused Value-network forward pass as a single pallas_call.

    x: (N, num_inputs) float array (kept in its native dtype; cast to f32
       inside the kernel, matching the torch `.to(float32)` semantics).
    params: dict with w1,b1,w2,b2,w3,b3,w4,b4
      wK: (in_features, out_features)   bK: (1, out_features)
    Returns: (N, 1) float32
    """
    if not jnp.issubdtype(x.dtype, jnp.floating):
        x = x.astype(jnp.float32)
    n, ni = x.shape
    hidden = params["w1"].shape[1]

    packed, (o1, o2, o3, ob) = _pack_params(params)

    if batch_tile is None:
        batch_tile = _default_batch_tile(n)
    if batch_tile <= 0:
        raise ValueError("batch_tile must be positive")
    n_pad = _round_up(n, batch_tile)
    num_tiles = n_pad // batch_tile
    if num_tiles > 1 and batch_tile % 8 != 0:
        raise ValueError(
            "batch_tile must be a multiple of 8 unless it covers the whole batch")
    if n_pad != n:
        x = jnp.pad(x, ((0, n_pad - n), (0, 0)))

    kernel = functools.partial(
        _value_mlp_kernel, ni=ni, hidden=hidden, o1=o1, o2=o2, o3=o3, ob=ob)

    cost = pl.CostEstimate(
        flops=2 * n_pad * (ni * hidden + 2 * hidden * hidden + hidden),
        transcendentals=3 * n_pad * hidden,
        bytes_accessed=int(n_pad * ni * x.dtype.itemsize
                           + packed.size * packed.dtype.itemsize
                           + n_pad * 4),
    )

    in_specs = [
        # x is the only streamed operand (native dtype -> fewer HBM bytes).
        # If profiling ever shows its DMA still exposed, pipeline_mode=
        # pl.Buffered(3) on this spec is the next lever.
        pl.BlockSpec((batch_tile, ni), lambda i: (i, 0)),
        # Packed weights+biases: one full-extent resident block (index map is
        # grid-invariant, so Pallas only DMAs it once).
        pl.BlockSpec(packed.shape, lambda i: (0, 0)),
    ]
    out_specs = pl.BlockSpec((batch_tile, 1), lambda i: (i, 0))

    out = pl.pallas_call(
        kernel,
        out_shape=jax.ShapeDtypeStruct((n_pad, 1), jnp.float32),
        grid_spec=pltpu.PrefetchScalarGridSpec(
            num_scalar_prefetch=0,
            grid=(num_tiles,),
            in_specs=in_specs,
            out_specs=out_specs,
        ),
        compiler_params=pltpu.CompilerParams(
            dimension_semantics=("parallel",),
        ),
        cost_estimate=cost,
    )(x, packed)

    return out[:n]


def init_value_params(key, num_inputs, hidden_size):
    """PyTorch nn.Linear-style init: U(-1/sqrt(fan_in), 1/sqrt(fan_in)).
    Weights stored as (in_features, out_features); biases as (1, out)."""
    def linear(key, fan_in, fan_out):
        kw, kb = jax.random.split(key)
        bound = 1.0 / math.sqrt(fan_in)
        w = jax.random.uniform(kw, (fan_in, fan_out), jnp.float32,
                               minval=-bound, maxval=bound)
        b = jax.random.uniform(kb, (1, fan_out), jnp.float32,
                               minval=-bound, maxval=bound)
        return w, b

    k1, k2, k3, k4 = jax.random.split(key, 4)
    w1, b1 = linear(k1, num_inputs, hidden_size)
    w2, b2 = linear(k2, hidden_size, hidden_size)
    w3, b3 = linear(k3, hidden_size, hidden_size)
    w4, b4 = linear(k4, hidden_size, 1)
    return dict(w1=w1, b1=b1, w2=w2, b2=b2, w3=w3, b3=b3, w4=w4, b4=b4)


def value_ref(x, params):
    """Pure-JAX reference (mirrors the PyTorch forward)."""
    x = x.astype(jnp.float32)
    h = jnp.tanh(x @ params["w1"] + params["b1"])
    h = jnp.tanh(h @ params["w2"] + params["b2"])
    h = jnp.tanh(h @ params["w3"] + params["b3"])
    return h @ params["w4"] + params["b4"]


if __name__ == "__main__":
    num_inputs = 16   # N_state
    hidden_size = 32
    batch = 8         # N_sample

    key = jax.random.PRNGKey(0)
    kx, kp = jax.random.split(key)
    x = jax.random.normal(kx, (batch, num_inputs), jnp.float32)
    params = init_value_params(kp, num_inputs, hidden_size)

    out = jax.block_until_ready(value_forward(x, params))
    ref = value_ref(x, params)
    assert out.shape == (batch, 1), out.shape
    assert jnp.allclose(out, ref, atol=1e-5, rtol=1e-5), (
        f"max abs err {jnp.max(jnp.abs(out - ref))}")

    # Exercise the tiled / padded / bf16-input path (>=2 grid steps, ragged n).
    big_n = 300
    xb = jax.random.normal(jax.random.PRNGKey(1), (big_n, num_inputs),
                           jnp.float32).astype(jnp.bfloat16)
    out_b = jax.block_until_ready(value_forward(xb, params))
    ref_b = value_ref(xb.astype(jnp.float32), params)
    assert out_b.shape == (big_n, 1), out_b.shape
    assert jnp.allclose(out_b, ref_b, atol=1e-4, rtol=1e-4), (
        f"max abs err {jnp.max(jnp.abs(out_b - ref_b))}")

    print("KERNEL_OK")
</pallas_src>

<mosaic_0001>
module attributes {stable_mosaic.version = 11 : i64} {
  func.func @_value_mlp_kernel(%arg0: i32, %arg1: memref<8x16xf32, #tpu.memory_space<vmem>>, %arg2: memref<88x32xf32, #tpu.memory_space<vmem>>, %arg3: memref<8x1xf32, #tpu.memory_space<vmem>>) attributes {dimension_semantics = [#tpu.dimension_semantics<parallel>], iteration_bounds = array<i64: 1>, scalar_prefetch = 0 : i64, scratch_operands = 0 : i64, tpu.core_type = #tpu.core_type<tc>, window_params = [{transform_indices = @transform_0, window_bounds = array<i64: 8, 16>}, {pipeline_mode = #tpu.pipeline_mode<synchronous>, transform_indices = @transform_1, window_bounds = array<i64: 88, 32>}, {transform_indices = @transform_2, window_bounds = array<i64: 8, 1>}]} {
    %c0 = arith.constant 0 : index
    %c0_0 = arith.constant 0 : index
    %0 = vector.load %arg1[%c0, %c0_0] : memref<8x16xf32, #tpu.memory_space<vmem>>, vector<8x16xf32>
    %c0_1 = arith.constant 0 : index
    %c0_2 = arith.constant 0 : index
    %1 = vector.load %arg2[%c0_1, %c0_2] : memref<88x32xf32, #tpu.memory_space<vmem>>, vector<16x32xf32>
    %c16 = arith.constant 16 : index
    %c0_3 = arith.constant 0 : index
    %2 = vector.load %arg2[%c16, %c0_3] : memref<88x32xf32, #tpu.memory_space<vmem>>, vector<32x32xf32>
    %c48 = arith.constant 48 : index
    %c0_4 = arith.constant 0 : index
    %3 = vector.load %arg2[%c48, %c0_4] : memref<88x32xf32, #tpu.memory_space<vmem>>, vector<32x32xf32>
    %c80 = arith.constant 80 : index
    %c0_5 = arith.constant 0 : index
    %4 = vector.load %arg2[%c80, %c0_5] : memref<88x32xf32, #tpu.memory_space<vmem>>, vector<1x32xf32>
    %c81 = arith.constant 81 : index
    %c0_6 = arith.constant 0 : index
    %5 = vector.load %arg2[%c81, %c0_6] : memref<88x32xf32, #tpu.memory_space<vmem>>, vector<1x32xf32>
    %c82 = arith.constant 82 : index
    %c0_7 = arith.constant 0 : index
    %6 = vector.load %arg2[%c82, %c0_7] : memref<88x32xf32, #tpu.memory_space<vmem>>, vector<1x32xf32>
    %c83 = arith.constant 83 : index
    %c0_8 = arith.constant 0 : index
    %7 = vector.load %arg2[%c83, %c0_8] : memref<88x32xf32, #tpu.memory_space<vmem>>, vector<1x32xf32>
    %c84 = arith.constant 84 : index
    %c0_9 = arith.constant 0 : index
    %8 = vector.load %arg2[%c84, %c0_9] : memref<88x32xf32, #tpu.memory_space<vmem>>, vector<1x1xf32>
    %cst = arith.constant dense<0.000000e+00> : vector<8x32xf32>
    %9 = tpu.matmul %0, %1, %cst {dimension_numbers = #tpu.dot_dimension_numbers<[1], [0], [0], [1], [0, 0, 1, 1], [], []>} : vector<8x16xf32>, vector<16x32xf32>, vector<8x32xf32> -> vector<8x32xf32>
    %10 = vector.broadcast %4 : vector<1x32xf32> to vector<8x32xf32>
    %11 = arith.addf %9, %10 : vector<8x32xf32>
    %12 = math.tanh %11 : vector<8x32xf32>
    %cst_10 = arith.constant dense<0.000000e+00> : vector<8x32xf32>
    %13 = tpu.matmul %12, %2, %cst_10 {dimension_numbers = #tpu.dot_dimension_numbers<[1], [0], [0], [1], [0, 0, 1, 1], [], []>} : vector<8x32xf32>, vector<32x32xf32>, vector<8x32xf32> -> vector<8x32xf32>
    %14 = vector.broadcast %5 : vector<1x32xf32> to vector<8x32xf32>
    %15 = arith.addf %13, %14 : vector<8x32xf32>
    %16 = math.tanh %15 : vector<8x32xf32>
    %cst_11 = arith.constant dense<0.000000e+00> : vector<8x32xf32>
    %17 = tpu.matmul %16, %3, %cst_11 {dimension_numbers = #tpu.dot_dimension_numbers<[1], [0], [0], [1], [0, 0, 1, 1], [], []>} : vector<8x32xf32>, vector<32x32xf32>, vector<8x32xf32> -> vector<8x32xf32>
    %18 = vector.broadcast %6 : vector<1x32xf32> to vector<8x32xf32>
    %19 = arith.addf %17, %18 : vector<8x32xf32>
    %20 = math.tanh %19 : vector<8x32xf32>
    %21 = vector.broadcast %7 : vector<1x32xf32> to vector<8x32xf32>
    %22 = arith.mulf %20, %21 : vector<8x32xf32>
    %cst_12 = arith.constant dense<0.000000e+00> : vector<8xf32>
    %23 = vector.multi_reduction <add>, %22, %cst_12 [1] : vector<8x32xf32> to vector<8xf32>
    %24 = vector.shape_cast %23 : vector<8xf32> to vector<8x1xf32>
    %25 = vector.broadcast %8 : vector<1x1xf32> to vector<8x1xf32>
    %26 = arith.addf %24, %25 : vector<8x1xf32>
    %c0_13 = arith.constant 0 : index
    %c0_14 = arith.constant 0 : index
    %27 = vector.load %arg3[%c0_13, %c0_14] : memref<8x1xf32, #tpu.memory_space<vmem>>, vector<8x1xf32>
    tpu.vector_store %arg3[%c0_13, %c0_14], %26 {strides = array<i32>} : memref<8x1xf32, #tpu.memory_space<vmem>>, vector<8x1xf32>,
    return
  }
  func.func @transform_0(%arg0: i32) -> (i32, i32) {
    %c0_i32 = arith.constant 0 : i32
    %c0_i32_0 = arith.constant 0 : i32
    return %arg0, %c0_i32 : i32, i32
  }
  func.func @transform_1(%arg0: i32) -> (i32, i32) {
    %c0_i32 = arith.constant 0 : i32
    %c0_i32_0 = arith.constant 0 : i32
    %c0_i32_1 = arith.constant 0 : i32
    return %c0_i32, %c0_i32_0 : i32, i32
  }
  func.func @transform_2(%arg0: i32) -> (i32, i32) {
    %c0_i32 = arith.constant 0 : i32
    %c0_i32_0 = arith.constant 0 : i32
    return %arg0, %c0_i32 : i32, i32
  }
}

</mosaic_0001>

<bundles_post_ra>
// kernel: tpu_custom_call.1
= control target key start
LH: loop header
LB: loop body
LE: loop exit
PB: predicated region body
PF: predicated region fallthrough
CT: control target
= control target key end

     0   :  { %v356_v0 = vmov 0.0|0.0   ;;  %vm357_vm0 = vmmov 0   ;;  %v358_v3 = vmov 0.0   ;;  %vm31_vm1 = vcmask 130048   ;;  %s428_s1 = inlined_call_operand.vmem [shape: f32[88,32], index: 1, kind: input, shape index: {}]   ;;  %s429_s0 = inlined_call_operand.vmem [shape: f32[8,16], index: 0, kind: input, shape index: {}]   ;;  %s430_s2 = inlined_call_operand.vmem [shape: f32[8,1], index: 2, kind: output, shape index: {}]  }
   0x1   :  { %332 = vmatprep.subr.bf16.mxu0 %v356_v0  ;;  %v12_v1 = vld [vmem:[%s428_s1] sm:$0xff]  ;;  %v13_v2 = vld [vmem:[%s428_s1 + $0x8] sm:$0xff]  ;;  %307 = vmatprep.mubr.msk.f32.mxu0 %vm357_vm0, %v358_v3  ;;  %v14_v6 = vld [vmem:[%s428_s1 + $0x10] sm:$0xff]  ;;  %vm110_vm2 = vcmask 261120   ;;  %vm276_vm3 = vcmask 7168  }
   0x2   :  { %v333_v4 = vpack.c.bf16 %v13_v2, %v12_v1  ;;  %335 = vmatprep.subr.bf16.mxu1 %v356_v0  ;;  %318 = vmatprep.mubr.msk.f32.mxu1 %vm357_vm0, %v358_v3  ;;  %v11_v5 = vld [vmem:[%s429_s0] sm:$0xff]  ;;  %v15_v7 = vld [vmem:[%s428_s1 + $0x18] sm:$0xff]  ;;  %v17_v10 = vld [vmem:[%s428_s1 + $0x28] sm:$0xff] }
   0x3   :  { %v16_v8 = vld [vmem:[%s428_s1 + $0x20] sm:$0xff]  ;;  %v336_v9 = vpack.c.bf16 %v15_v7, %v14_v6  ;;  %v282_v12 = vld [vmem:[%s428_s1 + $0x50] ss:$0 sm:$0xff]  ;;  %v19_v18 = vld [vmem:[%s428_s1 + $0x38] sm:$0xff] }
   0x4   :  { %334 = vmatpush3.bf16.msra.mxu0 %v333_v4  ;;  %v339_v11 = vpack.c.bf16 %v17_v10, %v16_v8  ;;  %v18_v17 = vld [vmem:[%s428_s1 + $0x30] sm:$0xff]  ;;  %v20_v19 = vld [vmem:[%s428_s1 + $0x40] sm:$0xff]  ;;  %v21_v21 = vld [vmem:[%s428_s1 + $0x48] sm:$0xff] }
   0x5   :  { %341 = vmatprep.subr.bf16.mxu0 %v356_v0  ;;  %337 = vmatpush3.bf16.msra.mxu1 %v336_v9  ;;  %v342_v20 = vpack.c.bf16 %v19_v18, %v18_v17  ;;  %v345_v22 = vpack.c.bf16 %v21_v21, %v20_v19  ;;  %v284_v23 = vld [vmem:[%s428_s1 + $0x51] ss:$0 sm:$0xff]  ;;  %v286_v28 = vld [vmem:[%s428_s1 + $0x52] ss:$0 sm:$0xff]  ;;  %v288_v32 = vld [vmem:[%s428_s1 + $0x53] ss:$0 sm:$0xff] }
   0x6   :  { %338 = vmatprep.subr.bf16.mxu1 %v356_v0  ;;  %v289_v36 = vld [vmem:[%s428_s1 + $0x54] ss:$0 sm:$0xff] }
   0x7   :  { %308 = vmatmul.mubr.msk.f32.vlgmr.msra.gmra.mrb[0].mxu0 %vm31_vm1, %v11_v5 }
   0x8   :  { %329 = vmatprep.mubr.msk.f32.mxu0 %vm357_vm0, %v358_v3  ;;  %343 = vmatpush3.bf16.msra.mxu0 %v342_v20 }
   0x9   :  { %340 = vmatpush3.bf16.msra.mxu1 %v339_v11  ;;  %344 = vmatprep.subr.bf16.mxu0 %v356_v0 }
   0xc   :  { %346 = vmatpush3.bf16.msra.mxu0 %v345_v22 }
  0xda   :  { %v101_v13 = vpop.f32.mrb[0].mxu0 }
  0xdb   :  { %v102_v14 = vadd.f32 %v282_v12, %v101_v13  ;;  %v309_v15 = vpop.f32.mrb[1].mxu0 }
  0xdd   :  { %350 = vtanh.f32 %v102_v14 }
  0xe7   :  { %v351_v16 = vpop.eup %350 }
  0xe8   :  { %319 = vmatmul.mubr.msk.f32.vlgmr.msra.gmra.mrb[0].mxu1 %vm110_vm2, %v351_v16 }
 0x1bb   :  { %v180_v24 = vpop.f32.mrb[0].mxu1 }
 0x1bc   :  { %v181_v25 = vadd.f32 %v284_v23, %v180_v24  ;;  %v320_v26 = vpop.f32.mrb[1].mxu1 }
 0x1be   :  { %352 = vtanh.f32 %v181_v25 }
 0x1c8   :  { %v353_v27 = vpop.eup %352 }
 0x1c9   :  { %330 = vmatmul.mubr.msk.f32.vlgmr.msra.gmra.mrb[2].mxu0 %vm110_vm2, %v353_v27 }
 0x29c   :  { %v258_v29 = vpop.f32.mrb[2].mxu0 }
 0x29d   :  { %v259_v30 = vadd.f32 %v286_v28, %v258_v29  ;;  %v331_v31 = vpop.f32.mrb[3].mxu0 }
 0x29f   :  { %354 = vtanh.f32 %v259_v30 }
 0x2a9   :  { %v355_v33 = vpop.eup %354 }
 0x2aa   :  { %v267_v34 = vmul.f32 %v355_v33, %v288_v32 }
 0x2ac   :  { %v268_v35 = vsel %vm110_vm2, %v267_v34, 0.0 }
 0x2ad   :  { %269 = vadd.xlane.f32.xlu0 %v268_v35 }
 0x33a   :  { %v270_v37 = vpop.xlane.xlu0 %269 }
 0x33b   :  { %v275_v38 = vadd.f32 %v289_v36, %v270_v37 }
 0x33d   :  { %277 = vst.msk [vmem:[%s430_s2] sm:$0xff] %vm276_vm3, %v275_v38 }

</bundles_post_ra>
